<compile_context>
chip_gen: v7x
topology: tpu7x:2x2x1
jax: 0.10.0
libtpu: 0.0.40
codegen_flags: <defaults>
</compile_context>

<pallas_src>
import functools

import jax
import jax.numpy as jnp
from jax import lax
from jax.experimental import pallas as pl
from jax.experimental.pallas import tpu as pltpu

_EPS = 1e-12  # matches torch.nn.functional.normalize default


def _round_up(x, m):
    return (x + m - 1) // m * m


def _vmem_budget():
    """(vmem_limit_bytes, usable pipeline-buffer budget) for this chip."""
    phys = 64 * 1024 * 1024  # conservative fallback (v7x-sized)
    try:
        info = pltpu.get_tpu_info()
        cap = getattr(info, "vmem_capacity_bytes", None)
        if cap:
            phys = int(cap)
    except Exception:
        pass
    vmem_limit = min(phys * 3 // 4, 112 * 1024 * 1024)   # 96 MiB v5e/v6e, 48 MiB v7x
    buf_budget = int(vmem_limit * 0.8)
    return vmem_limit, buf_budget


# --------------------------------------------------------------------------
# Kernel 1: row-wise L2 normalization with a folded scalar scale -> bf16.
# Used once for img (scale = 1/temp) so the hot matmul loop does no VPU/EUP
# work and reads bf16 instead of f32.
# --------------------------------------------------------------------------
def _normalize_scale_kernel(x_ref, o_ref, *, inv_scale):
    x = x_ref[...].astype(jnp.float32)
    sumsq = jnp.sum(x * x, axis=-1, keepdims=True)
    # max(||x||, eps) == sqrt(max(sumsq, eps^2)); rsqrt goes to the EUP.
    r = lax.rsqrt(jnp.maximum(sumsq, jnp.float32(_EPS * _EPS)))
    o_ref[...] = (x * (jnp.float32(inv_scale) * r)).astype(o_ref.dtype)


# --------------------------------------------------------------------------
# Kernel 2: row-wise L2 normalization + transpose -> K-major bf16 concept.
# Output block is (emb, tn): lane-dense along classes, contraction-major rows.
# --------------------------------------------------------------------------
def _normalize_t_kernel(x_ref, o_ref):
    x = x_ref[...].astype(jnp.float32)                       # (tn, emb)
    sumsq = jnp.sum(x * x, axis=-1, keepdims=True)
    r = lax.rsqrt(jnp.maximum(sumsq, jnp.float32(_EPS * _EPS)))
    o_ref[...] = (x * r).T.astype(o_ref.dtype)               # (emb, tn)


# --------------------------------------------------------------------------
# Kernel 3: pure bf16 x bf16 MXU matmul with f32 accumulation.
# Works for both the 1-D (VMEM-resident concept) and 2-D (tiled concept) grids.
# --------------------------------------------------------------------------
def _matmul_kernel(a_ref, b_ref, o_ref):
    o_ref[...] = jnp.dot(a_ref[...], b_ref[...],
                         preferred_element_type=jnp.float32)


def _normalize_rows_bf16(x, inv_scale, vmem_limit, buf_budget):
    rows, emb = x.shape                    # rows is a multiple of 8
    t = ((buf_budget // 2) // (12 * emb)) // 16 * 16
    t = max(8, min(t, 512, rows))
    return pl.pallas_call(
        functools.partial(_normalize_scale_kernel, inv_scale=inv_scale),
        out_shape=jax.ShapeDtypeStruct((rows, emb), jnp.bfloat16),
        grid=(pl.cdiv(rows, t),),
        in_specs=[pl.BlockSpec((t, emb), lambda i: (i, 0))],
        out_specs=pl.BlockSpec((t, emb), lambda i: (i, 0)),
        compiler_params=pltpu.CompilerParams(
            dimension_semantics=("parallel",),
            vmem_limit_bytes=vmem_limit),
    )(x)


def _normalize_concept_t_bf16(con_p, vmem_limit, buf_budget):
    """con_p: (n_pad, emb) f32, zero-padded rows -> (emb, n_pad) bf16."""
    n_pad, emb = con_p.shape
    tn = 128
    for cand in (1024, 512, 256, 128):
        if cand <= n_pad and n_pad % cand == 0 and 12 * cand * emb <= buf_budget // 2:
            tn = cand
            break
    return pl.pallas_call(
        _normalize_t_kernel,
        out_shape=jax.ShapeDtypeStruct((emb, n_pad), jnp.bfloat16),
        grid=(n_pad // tn,),
        in_specs=[pl.BlockSpec((tn, emb), lambda j: (j, 0))],
        out_specs=pl.BlockSpec((emb, tn), lambda j: (0, j)),
        compiler_params=pltpu.CompilerParams(
            dimension_semantics=("parallel",),
            vmem_limit_bytes=vmem_limit),
    )(con_p)


def cosine_classifier(img, concept, temp=0.05, scale=True):
    """img: (bs, emb_dim), concept: (n_class, emb_dim) -> (bs, n_class) f32."""
    bs, emb = img.shape
    n_class, emb2 = concept.shape
    assert emb == emb2

    vmem_limit, buf_budget = _vmem_budget()
    inv_temp = (1.0 / float(temp)) if scale else 1.0

    # ---- concept: normalize once, emit K-major (emb, n_pad) bf16 ----------
    # TODO(synk): concept is a classifier weight; in a real model cache this
    # normalized/transposed copy across forward calls instead of recomputing.
    n_pad = _round_up(n_class, 128)        # lane-dense output columns
    con_p = concept.astype(jnp.float32)
    if n_pad != n_class:
        con_p = jnp.pad(con_p, ((0, n_pad - n_class), (0, 0)))
    con_t = _normalize_concept_t_bf16(con_p, vmem_limit, buf_budget)

    # ---- img: normalize once (1/temp folded), emit bf16 -------------------
    bs8 = _round_up(bs, 8)
    img_p = img.astype(jnp.float32)
    if bs8 != bs:                          # pad only the few missing rows
        img_p = jnp.pad(img_p, ((0, bs8 - bs), (0, 0)))
    img_n = _normalize_rows_bf16(img_p, inv_temp, vmem_limit, buf_budget)

    # ---- main matmul -------------------------------------------------------
    resident_bytes = 2 * emb * n_pad * 2                 # double-buffered RHS
    per_row_res = 2 * (emb * 2 + n_pad * 4)              # img bf16 + out f32
    resident = resident_bytes + 16 * per_row_res <= buf_budget

    if resident:
        # Concept lives in VMEM for the whole grid (index_map constant -> one DMA).
        tm = max(16, min((buf_budget - resident_bytes) // per_row_res // 16 * 16,
                         1024))
        tm = min(tm, bs8)
        if bs8 >= 32:                       # keep >=2 blocks for the 2 TCs (v7x)
            tm = min(tm, _round_up((bs8 + 1) // 2, 16))
        grid_i = pl.cdiv(bs8, tm)
        grid = (grid_i,)
        in_specs = [pl.BlockSpec((tm, emb), lambda i: (i, 0)),
                    pl.BlockSpec((emb, n_pad), lambda i: (0, 0))]
        out_specs = pl.BlockSpec((tm, n_pad), lambda i: (i, 0))
        dims = ("parallel",)
        con_reads = emb * n_pad * 2
    else:
        tn = 128
        for cand in (1024, 512, 256, 128):
            if n_pad % cand == 0:
                tn = cand
                break
        per_row = 2 * (emb * 2 + tn * 4)
        avail = max(buf_budget - 2 * emb * tn * 2, 0)
        tm = max(16, min(avail // per_row // 16 * 16, 1024))
        tm = min(tm, bs8)
        if bs8 >= 32:
            tm = min(tm, _round_up((bs8 + 1) // 2, 16))
        grid_i = pl.cdiv(bs8, tm)
        grid = (grid_i, n_pad // tn)
        in_specs = [pl.BlockSpec((tm, emb), lambda i, j: (i, 0)),
                    pl.BlockSpec((emb, tn), lambda i, j: (0, j))]
        out_specs = pl.BlockSpec((tm, tn), lambda i, j: (i, j))
        dims = ("parallel", "parallel")
        con_reads = grid_i * emb * n_pad * 2

    cost = pl.CostEstimate(
        flops=2 * bs8 * n_pad * emb,
        transcendentals=0,                       # rsqrt lives in the prep kernels
        bytes_accessed=bs8 * emb * 2 + con_reads + bs * n_pad * 4)

    out = pl.pallas_call(
        _matmul_kernel,
        out_shape=jax.ShapeDtypeStruct((bs, n_pad), jnp.float32),
        grid=grid,
        in_specs=in_specs,
        out_specs=out_specs,
        compiler_params=pltpu.CompilerParams(
            dimension_semantics=dims,
            vmem_limit_bytes=vmem_limit),
        cost_estimate=cost,
    )(img_n, con_t)

    if n_pad != n_class:
        out = out[:, :n_class]
    return out


# --------------------------------------------------------------------------
# Pure-JAX reference (f32 everywhere).
# --------------------------------------------------------------------------
def _reference(img, concept, temp=0.05, scale=True):
    eps = 1e-12
    img_n = img / jnp.maximum(jnp.linalg.norm(img, axis=-1, keepdims=True), eps)
    con_n = concept / jnp.maximum(
        jnp.linalg.norm(concept, axis=-1, keepdims=True), eps)
    pred = img_n @ con_n.T
    if scale:
        pred = pred / temp
    return pred


if __name__ == "__main__":
    key = jax.random.PRNGKey(0)
    k_img, k_con = jax.random.split(key)

    bs, n_class, emb_dim = 8, 16, 128  # small shapes consistent with the module
    img = jax.random.normal(k_img, (bs, emb_dim), dtype=jnp.float32)
    concept = jax.random.normal(k_con, (n_class, emb_dim), dtype=jnp.float32)

    # scale=True path (logits scaled by 1/temp = 20; bf16 MXU operands).
    pred = jax.block_until_ready(cosine_classifier(img, concept, temp=0.05,
                                                   scale=True))
    ref = _reference(img, concept, temp=0.05, scale=True)
    assert pred.shape == (bs, n_class)
    assert jnp.allclose(pred, ref, atol=1e-1, rtol=2e-2), "mismatch (scale=True)"

    # scale=False path (raw cosine similarities in [-1, 1]).
    pred_ns = jax.block_until_ready(cosine_classifier(img, concept, temp=0.05,
                                                      scale=False))
    ref_ns = _reference(img, concept, temp=0.05, scale=False)
    assert jnp.allclose(pred_ns, ref_ns, atol=1e-2, rtol=2e-2), \
        "mismatch (scale=False)"

    print("KERNEL_OK")
</pallas_src>

<mosaic_0001>
module attributes {stable_mosaic.version = 11 : i64} {
  func.func @_normalize_t_kernel(%arg0: i32, %arg1: memref<128x128xf32, #tpu.memory_space<vmem>>, %arg2: memref<128x128xbf16, #tpu.memory_space<vmem>>) attributes {dimension_semantics = [#tpu.dimension_semantics<parallel>], iteration_bounds = array<i64: 1>, scalar_prefetch = 0 : i64, scratch_operands = 0 : i64, tpu.core_type = #tpu.core_type<tc>, window_params = [{transform_indices = @transform_0, window_bounds = array<i64: 128, 128>}, {transform_indices = @transform_1, window_bounds = array<i64: 128, 128>}]} {
    %c0 = arith.constant 0 : index
    %c0_0 = arith.constant 0 : index
    %0 = vector.load %arg1[%c0, %c0_0] : memref<128x128xf32, #tpu.memory_space<vmem>>, vector<128x128xf32>
    %1 = arith.mulf %0, %0 : vector<128x128xf32>
    %cst = arith.constant dense<0.000000e+00> : vector<128xf32>
    %2 = vector.multi_reduction <add>, %1, %cst [1] : vector<128x128xf32> to vector<128xf32>
    %3 = vector.shape_cast %2 : vector<128xf32> to vector<128x1xf32>
    %cst_1 = arith.constant 1.000000e-24 : f32
    %4 = vector.broadcast %cst_1 : f32 to vector<128x1xf32>
    %5 = arith.maximumf %3, %4 : vector<128x1xf32>
    %6 = math.rsqrt %5 : vector<128x1xf32>
    %7 = vector.broadcast %6 : vector<128x1xf32> to vector<128x128xf32>
    %8 = arith.mulf %0, %7 : vector<128x128xf32>
    %9 = tpu.transpose %8, [1, 0] : vector<128x128xf32> -> vector<128x128xf32>
    %10 = arith.truncf %9 : vector<128x128xf32> to vector<128x128xbf16>
    %c0_2 = arith.constant 0 : index
    %c0_3 = arith.constant 0 : index
    %11 = vector.load %arg2[%c0_2, %c0_3] : memref<128x128xbf16, #tpu.memory_space<vmem>>, vector<128x128xbf16>
    tpu.vector_store %arg2[%c0_2, %c0_3], %10 {strides = array<i32>} : memref<128x128xbf16, #tpu.memory_space<vmem>>, vector<128x128xbf16>,
    return
  }
  func.func @transform_0(%arg0: i32) -> (i32, i32) {
    %c0_i32 = arith.constant 0 : i32
    %c0_i32_0 = arith.constant 0 : i32
    return %arg0, %c0_i32 : i32, i32
  }
  func.func @transform_1(%arg0: i32) -> (i32, i32) {
    %c0_i32 = arith.constant 0 : i32
    %c0_i32_0 = arith.constant 0 : i32
    return %c0_i32, %arg0 : i32, i32
  }
}

</mosaic_0001>

<bundles_post_ra>
// kernel: tpu_custom_call.1
= control target key start
LH: loop header
LB: loop body
LE: loop exit
PB: predicated region body
PF: predicated region fallthrough
CT: control target
= control target key end

     0   :  { %6 = vsyncpa [#allocation3], 0  ;;  %s549_s0 = inlined_call_operand.hbm [shape: f32[128,128], index: 0, kind: input, shape index: {}]   ;;  %s550_s1 = inlined_call_operand.hbm [shape: bf16[128,128], index: 1, kind: output, shape index: {}]  }
   0x1   :  { %7 = vsyncpa [#allocation4], 0  ;;  %s429_s6 = smov [#allocation2]   ;;  %s381_s10 = scalar_lea.hbm %s549_s0, 2048 }
   0x2   :  { %s13_s7 = sshll.u32 %s429_s6, 4  ;;  %p382_p0 = scmp.ne.s32.totalorder %s549_s0, %s381_s10  ;;  %s14_s7 = int_to_ptr.vmem [resolvable:$true] %s13_s7 }
   0x3   :  { %p385_p1 = scmp.lt.u32.totalorder %s381_s10, %s549_s0 }
   0x5   :  { %p387_p2 = pnand %p385_p1, %p382_p0 }
   0x7   :  { %390 = shalt.err (!%p387_p2)
}
   0x8   :  { %s391_s15 = scalar_lea.vmem %s14_s7, 2048  ;;  %p396_p4 = scmp.lt.s32.totalorder %s14_s7, %s14_s7 }
   0x9   :  { %p392_p3 = scmp.ne.s32.totalorder %s14_s7, %s391_s15  ;;  %p397_p5 = scmp.lt.s32.totalorder %s391_s15, %s391_s15 }
   0xb   :  { %p398_p6 = por %p397_p5, %p396_p4 }
   0xd   :  { %p399_p7 = pnand %p398_p6, %p392_p3 }
   0xf   :  { %402 = shalt.err (!%p399_p7)
}
  0x10   :  { %s430_s16 = smov 128   ;;  %s431_s17 = smov 8  }
  0x11   :  { %19 = dma.hbm_to_vmem [thread:$0]  %s549_s0, 2048, %s14_s7, [#allocation3], %s430_s16, %s430_s16, %s431_s17  }
  0x12   :  { %425 = dma.done.wait [#allocation3], 2048  }
  0x13   :  { %426 = vsyncadd [#allocation3], 4294965248  ;;  %v457_v0 = vld [vmem:[#allocation2] sm:$0xff]  ;;  %v459_v1 = vld [vmem:[#allocation2 + $0x8] sm:$0xff]  ;;  %s432_s0 = smov [#allocation5]  }
  0x14   :  { %v461_v2 = vld [vmem:[#allocation2 + $0x10] sm:$0xff]  ;;  %v39_v3 = vmul.f32 %v457_v0, %v457_v0  ;;  %v467_v5 = vld [vmem:[#allocation2 + $0x18] sm:$0xff]  ;;  %v40_v6 = vmul.f32 %v459_v1, %v459_v1  ;;  %v473_v8 = vld [vmem:[#allocation2 + $0x20] sm:$0xff]  ;;  %s252_s20 = sshll.u32 %s432_s0, 4  ;;  %s253_s20 = int_to_ptr.vmem [resolvable:$true] %s252_s20 }
  0x15   :  { %v41_v4 = vmul.f32 %v461_v2, %v461_v2  ;;  %v42_v7 = vmul.f32 %v467_v5, %v467_v5  ;;  %v475_v9 = vld [vmem:[#allocation2 + $0x28] sm:$0xff]  ;;  %v43_v10 = vmul.f32 %v473_v8, %v473_v8  ;;  %v481_v12 = vld [vmem:[#allocation2 + $0x30] sm:$0xff]  ;;  %v483_v13 = vld [vmem:[#allocation2 + $0x38] sm:$0xff]  ;;  %s403_s21 = scalar_lea.vmem %s253_s20, 1024  ;;  %p408_p9 = scmp.lt.s32.totalorder %s253_s20, %s253_s20 }
  0x16   :  { %55 = vadd.xlane.f32.xlu0 %v39_v3  ;;  %v44_v11 = vmul.f32 %v475_v9, %v475_v9  ;;  %v45_v14 = vmul.f32 %v481_v12, %v481_v12  ;;  %v46_v15 = vmul.f32 %v483_v13, %v483_v13  ;;  %v489_v16 = vld [vmem:[#allocation2 + $0x40] sm:$0xff]  ;;  %v491_v17 = vld [vmem:[#allocation2 + $0x48] sm:$0xff]  ;;  %v497_v20 = vld [vmem:[#allocation2 + $0x50] sm:$0xff]  ;;  %p404_p8 = scmp.ne.s32.totalorder %s253_s20, %s403_s21  ;;  %p409_p10 = scmp.lt.s32.totalorder %s403_s21, %s403_s21 }
  0x17   :  { %59 = vadd.xlane.f32.xlu1 %v41_v4  ;;  %v47_v18 = vmul.f32 %v489_v16, %v489_v16  ;;  %v48_v19 = vmul.f32 %v491_v17, %v491_v17  ;;  %v499_v21 = vld [vmem:[#allocation2 + $0x58] sm:$0xff]  ;;  %v49_v22 = vmul.f32 %v497_v20, %v497_v20  ;;  %v505_v24 = vld [vmem:[#allocation2 + $0x60] sm:$0xff]  ;;  %v507_v25 = vld [vmem:[#allocation2 + $0x68] sm:$0xff] }
  0x18   :  { %v50_v23 = vmul.f32 %v499_v21, %v499_v21  ;;  %v51_v26 = vmul.f32 %v505_v24, %v505_v24  ;;  %v52_v27 = vmul.f32 %v507_v25, %v507_v25  ;;  %v513_v28 = vld [vmem:[#allocation2 + $0x70] sm:$0xff]  ;;  %v515_v29 = vld [vmem:[#allocation2 + $0x78] sm:$0xff]  ;;  %p410_p11 = por %p409_p10, %p408_p9 }
  0x19   :  { %v53_v30 = vmul.f32 %v513_v28, %v513_v28  ;;  %v54_v31 = vmul.f32 %v515_v29, %v515_v29 }
  0x1a   :  { %57 = vadd.xlane.f32.xlu0 %v40_v6  ;;  %p411_p12 = pnand %p410_p11, %p404_p8 }
  0x1b   :  { %61 = vadd.xlane.f32.xlu1 %v42_v7 }
  0x1e   :  { %63 = vadd.xlane.f32.xlu0 %v43_v10 }
  0x1f   :  { %65 = vadd.xlane.f32.xlu1 %v44_v11 }
  0x22   :  { %67 = vadd.xlane.f32.xlu0 %v45_v14 }
  0x23   :  { %69 = vadd.xlane.f32.xlu1 %v46_v15 }
  0x26   :  { %71 = vadd.xlane.f32.xlu0 %v47_v18 }
  0x27   :  { %73 = vadd.xlane.f32.xlu1 %v48_v19 }
  0x2a   :  { %75 = vadd.xlane.f32.xlu0 %v49_v22 }
  0x2b   :  { %77 = vadd.xlane.f32.xlu1 %v50_v23 }
  0x2e   :  { %79 = vadd.xlane.f32.xlu0 %v51_v26 }
  0x2f   :  { %81 = vadd.xlane.f32.xlu1 %v52_v27 }
  0x32   :  { %83 = vadd.xlane.f32.xlu0 %v53_v30 }
  0x33   :  { %85 = vadd.xlane.f32.xlu1 %v54_v31 }
  0xa3   :  { %v56_v32 = vpop.xlane.xlu0 %55 }
  0xa4   :  { %v60_v33 = vpop.xlane.xlu1 %59  ;;  %v87_v34 = vmax.f32 %v56_v32, 1e-24 }
  0xa5   :  { %v89_v35 = vmax.f32 %v60_v33, 1e-24 }
  0xa6   :  { %349 = vrsqrt.f32 %v87_v34 }
  0xa7   :  { %v58_v36 = vpop.xlane.xlu0 %57  ;;  %351 = vrsqrt.f32 %v89_v35 }
  0xa8   :  { %v62_v37 = vpop.xlane.xlu1 %61  ;;  %v88_v38 = vmax.f32 %v58_v36, 1e-24 }
  0xa9   :  { %v90_v39 = vmax.f32 %v62_v37, 1e-24 }
  0xaa   :  { %353 = vrsqrt.f32 %v88_v38 }
  0xab   :  { %v64_v40 = vpop.xlane.xlu0 %63  ;;  %355 = vrsqrt.f32 %v90_v39 }
  0xac   :  { %v91_v41 = vmax.f32 %v64_v40, 1e-24  ;;  %v66_v42 = vpop.xlane.xlu1 %65 }
  0xad   :  { %v92_v45 = vmax.f32 %v66_v42, 1e-24 }
  0xae   :  { %357 = vrsqrt.f32 %v91_v41 }
  0xaf   :  { %v68_v47 = vpop.xlane.xlu0 %67  ;;  %359 = vrsqrt.f32 %v92_v45 }
  0xb0   :  { %v350_v43 = vpop.eup %349  ;;  %v93_v50 = vmax.f32 %v68_v47, 1e-24  ;;  %v70_v52 = vpop.xlane.xlu1 %69 }
  0xb1   :  { %v119_v44 = vmul.f32 %v350_v43, %v457_v0  ;;  %v352_v46 = vpop.eup %351  ;;  %v94_v54 = vmax.f32 %v70_v52, 1e-24 }
  0xb2   :  { %v121_v51 = vmul.f32 %v352_v46, %v461_v2  ;;  %361 = vrsqrt.f32 %v93_v50 }
  0xb3   :  { %135 = vxpose.xlu0.b32.start [1/16] %v119_v44, 128  ;;  %v72_v56 = vpop.xlane.xlu0 %71  ;;  %363 = vrsqrt.f32 %v94_v54 }
  0xb4   :  { %v354_v48 = vpop.eup %353  ;;  %v95_v58 = vmax.f32 %v72_v56, 1e-24  ;;  %v74_v60 = vpop.xlane.xlu1 %73 }
  0xb5   :  { %v120_v49 = vmul.f32 %v354_v48, %v459_v1  ;;  %v356_v53 = vpop.eup %355  ;;  %v96_v62 = vmax.f32 %v74_v60, 1e-24 }
  0xb6   :  { %v122_v55 = vmul.f32 %v356_v53, %v467_v5  ;;  %365 = vrsqrt.f32 %v95_v58 }
  0xb7   :  { %136 = vxpose.xlu0.b32.cont [2/16] %v120_v49, 128  ;;  %v76_v0 = vpop.xlane.xlu0 %75  ;;  %367 = vrsqrt.f32 %v96_v62 }
  0xb8   :  { %v358_v57 = vpop.eup %357  ;;  %v97_v2 = vmax.f32 %v76_v0, 1e-24  ;;  %v78_v4 = vpop.xlane.xlu1 %77 }
  0xb9   :  { %v123_v59 = vmul.f32 %v358_v57, %v473_v8  ;;  %v360_v61 = vpop.eup %359  ;;  %v98_v6 = vmax.f32 %v78_v4, 1e-24 }
  0xba   :  { %v124_v63 = vmul.f32 %v360_v61, %v475_v9  ;;  %369 = vrsqrt.f32 %v97_v2 }
  0xbb   :  { %137 = vxpose.xlu0.b32.cont [3/16] %v121_v51, 128  ;;  %v80_v8 = vpop.xlane.xlu0 %79  ;;  %371 = vrsqrt.f32 %v98_v6 }
  0xbc   :  { %v362_v1 = vpop.eup %361  ;;  %v99_v11 = vmax.f32 %v80_v8, 1e-24  ;;  %v82_v14 = vpop.xlane.xlu1 %81 }
  0xbd   :  { %v125_v3 = vmul.f32 %v362_v1, %v481_v12  ;;  %v364_v5 = vpop.eup %363  ;;  %v100_v18 = vmax.f32 %v82_v14, 1e-24 }
  0xbe   :  { %v126_v7 = vmul.f32 %v364_v5, %v483_v13  ;;  %373 = vrsqrt.f32 %v99_v11 }
  0xbf   :  { %138 = vxpose.xlu0.b32.cont [4/16] %v122_v55, 128  ;;  %v84_v19 = vpop.xlane.xlu0 %83  ;;  %375 = vrsqrt.f32 %v100_v18 }
  0xc0   :  { %v366_v10 = vpop.eup %365  ;;  %v101_v23 = vmax.f32 %v84_v19, 1e-24  ;;  %v86_v26 = vpop.xlane.xlu1 %85 }
  0xc1   :  { %v127_v9 = vmul.f32 %v366_v10, %v489_v16  ;;  %v368_v15 = vpop.eup %367  ;;  %v102_v30 = vmax.f32 %v86_v26, 1e-24 }
  0xc2   :  { %v128_v12 = vmul.f32 %v368_v15, %v491_v17  ;;  %377 = vrsqrt.f32 %v101_v23 }
  0xc3   :  { %139 = vxpose.xlu0.b32.cont [5/16] %v123_v59, 128  ;;  %379 = vrsqrt.f32 %v102_v30 }
  0xc4   :  { %v370_v22 = vpop.eup %369 }
  0xc5   :  { %v129_v13 = vmul.f32 %v370_v22, %v497_v20  ;;  %v372_v27 = vpop.eup %371 }
  0xc6   :  { %v130_v16 = vmul.f32 %v372_v27, %v499_v21 }
  0xc7   :  { %140 = vxpose.xlu0.b32.cont [6/16] %v124_v63, 128 }
  0xc8   :  { %v374_v31 = vpop.eup %373 }
  0xc9   :  { %v131_v32 = vmul.f32 %v374_v31, %v505_v24  ;;  %v376_v17 = vpop.eup %375 }
  0xca   :  { %v132_v33 = vmul.f32 %v376_v17, %v507_v25 }
  0xcb   :  { %141 = vxpose.xlu0.b32.cont [7/16] %v125_v3, 128 }
  0xcc   :  { %v378_v34 = vpop.eup %377 }
  0xcd   :  { %v133_v20 = vmul.f32 %v378_v34, %v513_v28  ;;  %v380_v35 = vpop.eup %379 }
  0xce   :  { %v134_v36 = vmul.f32 %v380_v35, %v515_v29 }
  0xcf   :  { %142 = vxpose.xlu0.b32.cont [8/16] %v126_v7, 128 }
  0xd3   :  { %143 = vxpose.xlu0.b32.cont [9/16] %v127_v9, 128 }
  0xd7   :  { %144 = vxpose.xlu0.b32.cont [10/16] %v128_v12, 128 }
  0xdb   :  { %145 = vxpose.xlu0.b32.cont [11/16] %v129_v13, 128 }
  0xdf   :  { %146 = vxpose.xlu0.b32.cont [12/16] %v130_v16, 128 }
  0xe3   :  { %147 = vxpose.xlu0.b32.cont [13/16] %v131_v32, 128 }
  0xe7   :  { %148 = vxpose.xlu0.b32.cont [14/16] %v132_v33, 128 }
  0xeb   :  { %149 = vxpose.xlu0.b32.cont [15/16] %v133_v20, 128 }
  0xef   :  { %150 = vxpose.xlu0.b32.end [16/16] %v134_v36, 128 }
 0x133   :  { %v151_v37 = vpop.trf.xlu0 }
 0x137   :  { %v152_v21 = vpop.trf.xlu0 }
 0x138   :  { %v299_v38 = vpack.c.bf16 %v152_v21, %v151_v37 }
 0x13a   :  { %300 = vst [vmem:[#allocation5] sm:$0xff] %v299_v38  }
 0x13b   :  { %v153_v39 = vpop.trf.xlu0 }
 0x13f   :  { %v154_v40 = vpop.trf.xlu0 }
 0x140   :  { %v304_v24 = vpack.c.bf16 %v154_v40, %v153_v39 }
 0x142   :  { %336 = vst [vmem:[#allocation5 + $0x8] sm:$0xff] %v304_v24  }
 0x143   :  { %v155_v41 = vpop.trf.xlu0 }
 0x147   :  { %v156_v42 = vpop.trf.xlu0 }
 0x148   :  { %v309_v25 = vpack.c.bf16 %v156_v42, %v155_v41 }
 0x14a   :  { %337 = vst [vmem:[#allocation5 + $0x10] sm:$0xff] %v309_v25  }
 0x14b   :  { %v157_v43 = vpop.trf.xlu0 }
 0x14f   :  { %v158_v44 = vpop.trf.xlu0 }
 0x150   :  { %v314_v28 = vpack.c.bf16 %v158_v44, %v157_v43 }
 0x152   :  { %338 = vst [vmem:[#allocation5 + $0x18] sm:$0xff] %v314_v28  }
 0x153   :  { %v159_v45 = vpop.trf.xlu0 }
 0x157   :  { %v160_v46 = vpop.trf.xlu0 }
 0x158   :  { %v319_v29 = vpack.c.bf16 %v160_v46, %v159_v45 }
 0x15a   :  { %339 = vst [vmem:[#allocation5 + $0x20] sm:$0xff] %v319_v29  }
 0x15b   :  { %v161_v47 = vpop.trf.xlu0 }
 0x15f   :  { %v162_v48 = vpop.trf.xlu0 }
 0x160   :  { %v324_v49 = vpack.c.bf16 %v162_v48, %v161_v47 }
 0x162   :  { %340 = vst [vmem:[#allocation5 + $0x28] sm:$0xff] %v324_v49  }
 0x163   :  { %v163_v50 = vpop.trf.xlu0 }
 0x167   :  { %v164_v51 = vpop.trf.xlu0 }
 0x168   :  { %v329_v52 = vpack.c.bf16 %v164_v51, %v163_v50 }
 0x16a   :  { %341 = vst [vmem:[#allocation5 + $0x30] sm:$0xff] %v329_v52  }
 0x16b   :  { %v165_v53 = vpop.trf.xlu0 }
 0x16f   :  { %v166_v54 = vpop.trf.xlu0 }
 0x170   :  { %v334_v55 = vpack.c.bf16 %v166_v54, %v165_v53 }
 0x172   :  { %342 = vst [vmem:[#allocation5 + $0x38] sm:$0xff] %v334_v55  }
 0x173   :  { %414 = shalt.err (!%p411_p12)
}
 0x174   :  { %s415_s24 = scalar_lea.hbm %s550_s1, 1024 }
 0x175   :  { %p416_p13 = scmp.ne.s32.totalorder %s550_s1, %s415_s24  ;;  %p419_p0 = scmp.lt.u32.totalorder %s415_s24, %s550_s1 }
 0x177   :  { %p421_p1 = pnand %p419_p0, %p416_p13 }
 0x179   :  { %424 = shalt.err (!%p421_p1)
}
 0x17a   :  { %s433_s29 = smov 64   ;;  %s434_s30 = smov 4  }
 0x17b   :  { %258 = dma.vmem_to_hbm [thread:$0]  %s253_s20, 1024, %s550_s1, [#allocation4], %s433_s29, %s433_s29, %s434_s30  }
 0x17c   :  { %427 = dma.done.wait [#allocation4], 1024  }
 0x17d   :  { %428 = vsyncadd [#allocation4], 4294966272 }
 0x17e   :  { %262 = vsyncpa [#allocation3], 1 }
 0x17f   :  { %263 = vsyncpa [#allocation4], 1 }

</bundles_post_ra>
